<compile_context>
chip_gen: v5e
topology: v5e:2x2
jax: 0.10.0
libtpu: 0.0.40
codegen_flags: <defaults>
</compile_context>

<pallas_src>
import functools

import jax
import jax.numpy as jnp
from jax.experimental import pallas as pl
from jax.experimental.pallas import tpu as pltpu

N_HIDDEN0 = 100
N_HIDDEN1 = 50
N_CLASSES = 10
N_PAD = 128          # lane-dense feature width on all generations
BN_EPS = 1e-5


def _bn_relu(h, gamma, beta):
    """Training-mode BatchNorm1d + ReLU, one-pass stats, gamma folded into scale.

    Padded feature columns have gamma == beta == 0, so they come out exactly 0.
    """
    inv_n = 1.0 / h.shape[0]
    mean = jnp.sum(h, axis=0, keepdims=True) * inv_n
    ex2 = jnp.sum(h * h, axis=0, keepdims=True) * inv_n
    var = ex2 - mean * mean
    scale = gamma * jax.lax.rsqrt(var + BN_EPS)      # (1, 128)
    return jnp.maximum((h - mean) * scale + beta, 0.0)


def bestnet_kernel(x_ref, w0_ref, w1_ref, w2_ref, bn_ref, out_ref):
    # Cast input to f32 inside the kernel (no wrapper-side dtype inflation).
    x = x_ref[...].astype(jnp.float32)
    bn = bn_ref[...]                                  # (6, 128) f32 slab

    def mm(a, w_ref_):
        w = w_ref_[...]
        # Narrow only the MXU operands if weights were passed as bf16;
        # accumulate in f32 either way.
        return jnp.dot(a.astype(w.dtype), w, preferred_element_type=jnp.float32)

    h = _bn_relu(mm(x, w0_ref), bn[0:1], bn[1:2])     # fc0 -> bn0 -> relu
    h = _bn_relu(mm(h, w1_ref), bn[2:3], bn[3:4])     # fc1 -> bn1 -> relu
    h = _bn_relu(mm(h, w2_ref), bn[4:5], bn[5:6])     # fc2 -> bn2 -> relu

    # log_softmax over the real 10 classes; padded lanes masked to -inf.
    col = jax.lax.broadcasted_iota(jnp.int32, h.shape, 1)
    logits = jnp.where(col < N_CLASSES, h, -jnp.inf)
    m = jnp.max(logits, axis=1, keepdims=True)
    s = logits - m
    lse = jnp.log(jnp.sum(jnp.exp(s), axis=1, keepdims=True))
    out_ref[...] = s - lse                            # lane-dense (B, 128) store


def _pad2d(a, rows, cols):
    r, c = a.shape
    return jnp.pad(a, ((0, rows - r), (0, cols - c)))


@functools.partial(jax.jit, static_argnames=("image_size", "use_bf16_matmul"))
def bestnet_forward(x, params, *, image_size, use_bf16_matmul=False):
    # Flatten like x.view(-1, image_size); dtype cast happens inside the kernel.
    x2d = x.reshape(-1, image_size)
    B = x2d.shape[0]

    # Zero-pad weights to lane-dense 128-wide tiles; biases are intentionally
    # not passed (they cancel under training-mode BN).
    w_dtype = jnp.bfloat16 if use_bf16_matmul else jnp.float32
    w0p = _pad2d(params["w0"], image_size, N_PAD).astype(w_dtype)
    w1p = _pad2d(params["w1"], N_PAD, N_PAD).astype(w_dtype)
    w2p = _pad2d(params["w2"], N_PAD, N_PAD).astype(w_dtype)

    # Pack gamma/beta for all three BN layers into a single (6, 128) slab.
    bn = jnp.zeros((6, N_PAD), jnp.float32)
    bn = bn.at[0, :N_HIDDEN0].set(params["g0"])
    bn = bn.at[1, :N_HIDDEN0].set(params["be0"])
    bn = bn.at[2, :N_HIDDEN1].set(params["g1"])
    bn = bn.at[3, :N_HIDDEN1].set(params["be1"])
    bn = bn.at[4, :N_CLASSES].set(params["g2"])
    bn = bn.at[5, :N_CLASSES].set(params["be2"])

    # TODO(synk): for large batches, add a batch grid (parallel across v7x's two
    # TensorCores) and restructure BN into stats-accumulate + normalize passes so
    # batch statistics stay exact; current design keeps the whole batch VMEM-resident.
    vmem = pl.BlockSpec(memory_space=pltpu.MemorySpace.VMEM)
    out_padded = pl.pallas_call(
        bestnet_kernel,
        out_shape=jax.ShapeDtypeStruct((B, N_PAD), jnp.float32),
        in_specs=[vmem] * 5,
        out_specs=vmem,
        compiler_params=pltpu.CompilerParams(vmem_limit_bytes=64 * 1024 * 1024),
    )(x2d, w0p, w1p, w2p, bn)

    return out_padded[:, :N_CLASSES]


def init_params(key, image_size):
    """PyTorch-like init. Linear weights stored as (in, out) so the kernel
    computes x @ W (== PyTorch's x @ weight.T). Biases are generated (and used
    by the reference) but the kernel omits them — they cancel under BN."""
    ks = jax.random.split(key, 6)

    def linear(kw, kb, fan_in, fan_out):
        bound = 1.0 / jnp.sqrt(float(fan_in))
        w = jax.random.uniform(kw, (fan_in, fan_out), jnp.float32, -bound, bound)
        b = jax.random.uniform(kb, (fan_out,), jnp.float32, -bound, bound)
        return w, b

    w0, b0 = linear(ks[0], ks[1], image_size, N_HIDDEN0)
    w1, b1 = linear(ks[2], ks[3], N_HIDDEN0, N_HIDDEN1)
    w2, b2 = linear(ks[4], ks[5], N_HIDDEN1, N_CLASSES)

    return {
        "w0": w0, "b0": b0,
        "g0": jnp.ones((N_HIDDEN0,), jnp.float32), "be0": jnp.zeros((N_HIDDEN0,), jnp.float32),
        "w1": w1, "b1": b1,
        "g1": jnp.ones((N_HIDDEN1,), jnp.float32), "be1": jnp.zeros((N_HIDDEN1,), jnp.float32),
        "w2": w2, "b2": b2,
        "g2": jnp.ones((N_CLASSES,), jnp.float32), "be2": jnp.zeros((N_CLASSES,), jnp.float32),
    }


def _reference(x, params, image_size):
    """Faithful PyTorch-semantics reference (with biases, two-pass variance)."""
    x2d = x.reshape(-1, image_size).astype(jnp.float32)

    def bn_relu(h, g, b):
        mean = jnp.mean(h, axis=0, keepdims=True)
        var = jnp.mean((h - mean) ** 2, axis=0, keepdims=True)
        return jnp.maximum((h - mean) / jnp.sqrt(var + BN_EPS) * g + b, 0.0)

    h = bn_relu(x2d @ params["w0"] + params["b0"], params["g0"], params["be0"])
    h = bn_relu(h @ params["w1"] + params["b1"], params["g1"], params["be1"])
    h = bn_relu(h @ params["w2"] + params["b2"], params["g2"], params["be2"])
    return jax.nn.log_softmax(h, axis=1)


if __name__ == "__main__":
    image_size = 64   # e.g. flattened 8x8 "image"
    batch = 8

    key = jax.random.PRNGKey(0)
    kx, kp = jax.random.split(key)
    x = jax.random.normal(kx, (batch, image_size), jnp.float32)
    params = init_params(kp, image_size)

    out = bestnet_forward(x, params, image_size=image_size)
    out = jax.block_until_ready(out)

    ref = _reference(x, params, image_size)
    assert out.shape == (batch, N_CLASSES)
    assert jnp.allclose(out, ref, atol=1e-4, rtol=1e-4), "mismatch vs JAX reference"

    print("KERNEL_OK")
</pallas_src>

<mosaic_0001>
module attributes {stable_mosaic.version = 11 : i64} {
  func.func @bestnet_kernel(%arg0: memref<8x64xf32, #tpu.memory_space<vmem>>, %arg1: memref<64x128xf32, #tpu.memory_space<vmem>>, %arg2: memref<128x128xf32, #tpu.memory_space<vmem>>, %arg3: memref<128x128xf32, #tpu.memory_space<vmem>>, %arg4: memref<6x128xf32, #tpu.memory_space<vmem>>, %arg5: memref<8x128xf32, #tpu.memory_space<vmem>>) attributes {dimension_semantics = [], scalar_prefetch = 0 : i64, scratch_operands = 0 : i64, tpu.core_type = #tpu.core_type<tc>} {
    %c0 = arith.constant 0 : index
    %c0_0 = arith.constant 0 : index
    %0 = vector.load %arg0[%c0, %c0_0] : memref<8x64xf32, #tpu.memory_space<vmem>>, vector<8x64xf32>
    %c0_1 = arith.constant 0 : index
    %c0_2 = arith.constant 0 : index
    %1 = vector.load %arg4[%c0_1, %c0_2] : memref<6x128xf32, #tpu.memory_space<vmem>>, vector<6x128xf32>
    %c0_3 = arith.constant 0 : index
    %c0_4 = arith.constant 0 : index
    %2 = vector.load %arg1[%c0_3, %c0_4] : memref<64x128xf32, #tpu.memory_space<vmem>>, vector<64x128xf32>
    %cst = arith.constant dense<0.000000e+00> : vector<8x128xf32>
    %3 = tpu.matmul %0, %2, %cst {dimension_numbers = #tpu.dot_dimension_numbers<[1], [0], [0], [1], [0, 0, 1, 1], [], []>} : vector<8x64xf32>, vector<64x128xf32>, vector<8x128xf32> -> vector<8x128xf32>
    %4 = vector.extract_strided_slice %1 {offsets = [0, 0], sizes = [1, 128], strides = [1, 1]} : vector<6x128xf32> to vector<1x128xf32>
    %5 = vector.extract_strided_slice %1 {offsets = [1, 0], sizes = [1, 128], strides = [1, 1]} : vector<6x128xf32> to vector<1x128xf32>
    %cst_5 = arith.constant dense<0.000000e+00> : vector<128xf32>
    %6 = vector.multi_reduction <add>, %3, %cst_5 [0] : vector<8x128xf32> to vector<128xf32>
    %7 = vector.shape_cast %6 : vector<128xf32> to vector<1x128xf32>
    %cst_6 = arith.constant 1.250000e-01 : f32
    %8 = vector.broadcast %cst_6 : f32 to vector<1x128xf32>
    %9 = arith.mulf %7, %8 : vector<1x128xf32>
    %10 = arith.mulf %3, %3 : vector<8x128xf32>
    %cst_7 = arith.constant dense<0.000000e+00> : vector<128xf32>
    %11 = vector.multi_reduction <add>, %10, %cst_7 [0] : vector<8x128xf32> to vector<128xf32>
    %12 = vector.shape_cast %11 : vector<128xf32> to vector<1x128xf32>
    %cst_8 = arith.constant 1.250000e-01 : f32
    %13 = vector.broadcast %cst_8 : f32 to vector<1x128xf32>
    %14 = arith.mulf %12, %13 : vector<1x128xf32>
    %15 = arith.mulf %9, %9 : vector<1x128xf32>
    %16 = arith.subf %14, %15 : vector<1x128xf32>
    %cst_9 = arith.constant 9.99999974E-6 : f32
    %17 = vector.broadcast %cst_9 : f32 to vector<1x128xf32>
    %18 = arith.addf %16, %17 : vector<1x128xf32>
    %19 = math.rsqrt %18 : vector<1x128xf32>
    %20 = arith.mulf %4, %19 : vector<1x128xf32>
    %21 = vector.broadcast %9 : vector<1x128xf32> to vector<8x128xf32>
    %22 = arith.subf %3, %21 : vector<8x128xf32>
    %23 = vector.broadcast %20 : vector<1x128xf32> to vector<8x128xf32>
    %24 = arith.mulf %22, %23 : vector<8x128xf32>
    %25 = vector.broadcast %5 : vector<1x128xf32> to vector<8x128xf32>
    %26 = arith.addf %24, %25 : vector<8x128xf32>
    %cst_10 = arith.constant 0.000000e+00 : f32
    %27 = vector.broadcast %cst_10 : f32 to vector<8x128xf32>
    %28 = arith.maximumf %26, %27 : vector<8x128xf32>
    %c0_11 = arith.constant 0 : index
    %c0_12 = arith.constant 0 : index
    %29 = vector.load %arg2[%c0_11, %c0_12] : memref<128x128xf32, #tpu.memory_space<vmem>>, vector<128x128xf32>
    %cst_13 = arith.constant dense<0.000000e+00> : vector<8x128xf32>
    %30 = tpu.matmul %28, %29, %cst_13 {dimension_numbers = #tpu.dot_dimension_numbers<[1], [0], [0], [1], [0, 0, 1, 1], [], []>} : vector<8x128xf32>, vector<128x128xf32>, vector<8x128xf32> -> vector<8x128xf32>
    %31 = vector.extract_strided_slice %1 {offsets = [2, 0], sizes = [1, 128], strides = [1, 1]} : vector<6x128xf32> to vector<1x128xf32>
    %32 = vector.extract_strided_slice %1 {offsets = [3, 0], sizes = [1, 128], strides = [1, 1]} : vector<6x128xf32> to vector<1x128xf32>
    %cst_14 = arith.constant dense<0.000000e+00> : vector<128xf32>
    %33 = vector.multi_reduction <add>, %30, %cst_14 [0] : vector<8x128xf32> to vector<128xf32>
    %34 = vector.shape_cast %33 : vector<128xf32> to vector<1x128xf32>
    %cst_15 = arith.constant 1.250000e-01 : f32
    %35 = vector.broadcast %cst_15 : f32 to vector<1x128xf32>
    %36 = arith.mulf %34, %35 : vector<1x128xf32>
    %37 = arith.mulf %30, %30 : vector<8x128xf32>
    %cst_16 = arith.constant dense<0.000000e+00> : vector<128xf32>
    %38 = vector.multi_reduction <add>, %37, %cst_16 [0] : vector<8x128xf32> to vector<128xf32>
    %39 = vector.shape_cast %38 : vector<128xf32> to vector<1x128xf32>
    %cst_17 = arith.constant 1.250000e-01 : f32
    %40 = vector.broadcast %cst_17 : f32 to vector<1x128xf32>
    %41 = arith.mulf %39, %40 : vector<1x128xf32>
    %42 = arith.mulf %36, %36 : vector<1x128xf32>
    %43 = arith.subf %41, %42 : vector<1x128xf32>
    %cst_18 = arith.constant 9.99999974E-6 : f32
    %44 = vector.broadcast %cst_18 : f32 to vector<1x128xf32>
    %45 = arith.addf %43, %44 : vector<1x128xf32>
    %46 = math.rsqrt %45 : vector<1x128xf32>
    %47 = arith.mulf %31, %46 : vector<1x128xf32>
    %48 = vector.broadcast %36 : vector<1x128xf32> to vector<8x128xf32>
    %49 = arith.subf %30, %48 : vector<8x128xf32>
    %50 = vector.broadcast %47 : vector<1x128xf32> to vector<8x128xf32>
    %51 = arith.mulf %49, %50 : vector<8x128xf32>
    %52 = vector.broadcast %32 : vector<1x128xf32> to vector<8x128xf32>
    %53 = arith.addf %51, %52 : vector<8x128xf32>
    %cst_19 = arith.constant 0.000000e+00 : f32
    %54 = vector.broadcast %cst_19 : f32 to vector<8x128xf32>
    %55 = arith.maximumf %53, %54 : vector<8x128xf32>
    %c0_20 = arith.constant 0 : index
    %c0_21 = arith.constant 0 : index
    %56 = vector.load %arg3[%c0_20, %c0_21] : memref<128x128xf32, #tpu.memory_space<vmem>>, vector<128x128xf32>
    %cst_22 = arith.constant dense<0.000000e+00> : vector<8x128xf32>
    %57 = tpu.matmul %55, %56, %cst_22 {dimension_numbers = #tpu.dot_dimension_numbers<[1], [0], [0], [1], [0, 0, 1, 1], [], []>} : vector<8x128xf32>, vector<128x128xf32>, vector<8x128xf32> -> vector<8x128xf32>
    %58 = vector.extract_strided_slice %1 {offsets = [4, 0], sizes = [1, 128], strides = [1, 1]} : vector<6x128xf32> to vector<1x128xf32>
    %59 = vector.extract_strided_slice %1 {offsets = [5, 0], sizes = [1, 128], strides = [1, 1]} : vector<6x128xf32> to vector<1x128xf32>
    %cst_23 = arith.constant dense<0.000000e+00> : vector<128xf32>
    %60 = vector.multi_reduction <add>, %57, %cst_23 [0] : vector<8x128xf32> to vector<128xf32>
    %61 = vector.shape_cast %60 : vector<128xf32> to vector<1x128xf32>
    %cst_24 = arith.constant 1.250000e-01 : f32
    %62 = vector.broadcast %cst_24 : f32 to vector<1x128xf32>
    %63 = arith.mulf %61, %62 : vector<1x128xf32>
    %64 = arith.mulf %57, %57 : vector<8x128xf32>
    %cst_25 = arith.constant dense<0.000000e+00> : vector<128xf32>
    %65 = vector.multi_reduction <add>, %64, %cst_25 [0] : vector<8x128xf32> to vector<128xf32>
    %66 = vector.shape_cast %65 : vector<128xf32> to vector<1x128xf32>
    %cst_26 = arith.constant 1.250000e-01 : f32
    %67 = vector.broadcast %cst_26 : f32 to vector<1x128xf32>
    %68 = arith.mulf %66, %67 : vector<1x128xf32>
    %69 = arith.mulf %63, %63 : vector<1x128xf32>
    %70 = arith.subf %68, %69 : vector<1x128xf32>
    %cst_27 = arith.constant 9.99999974E-6 : f32
    %71 = vector.broadcast %cst_27 : f32 to vector<1x128xf32>
    %72 = arith.addf %70, %71 : vector<1x128xf32>
    %73 = math.rsqrt %72 : vector<1x128xf32>
    %74 = arith.mulf %58, %73 : vector<1x128xf32>
    %75 = vector.broadcast %63 : vector<1x128xf32> to vector<8x128xf32>
    %76 = arith.subf %57, %75 : vector<8x128xf32>
    %77 = vector.broadcast %74 : vector<1x128xf32> to vector<8x128xf32>
    %78 = arith.mulf %76, %77 : vector<8x128xf32>
    %79 = vector.broadcast %59 : vector<1x128xf32> to vector<8x128xf32>
    %80 = arith.addf %78, %79 : vector<8x128xf32>
    %cst_28 = arith.constant 0.000000e+00 : f32
    %81 = vector.broadcast %cst_28 : f32 to vector<8x128xf32>
    %82 = arith.maximumf %80, %81 : vector<8x128xf32>
    %83 = tpu.iota {dimensions = array<i32: 1>} : vector<8x128xi32>
    %c10_i32 = arith.constant 10 : i32
    %84 = vector.broadcast %c10_i32 : i32 to vector<8x128xi32>
    %85 = arith.cmpi slt, %83, %84 : vector<8x128xi32>
    %cst_29 = arith.constant 0xFF800000 : f32
    %86 = vector.broadcast %cst_29 : f32 to vector<8x128xf32>
    %87 = arith.select %85, %82, %86 : vector<8x128xi1>, vector<8x128xf32>
    %cst_30 = arith.constant dense<0xFF800000> : vector<8xf32>
    %88 = vector.multi_reduction <maximumf>, %87, %cst_30 [1] : vector<8x128xf32> to vector<8xf32>
    %89 = vector.shape_cast %88 : vector<8xf32> to vector<8x1xf32>
    %90 = vector.broadcast %89 : vector<8x1xf32> to vector<8x128xf32>
    %91 = arith.subf %87, %90 : vector<8x128xf32>
    %92 = math.exp %91 : vector<8x128xf32>
    %cst_31 = arith.constant dense<0.000000e+00> : vector<8xf32>
    %93 = vector.multi_reduction <add>, %92, %cst_31 [1] : vector<8x128xf32> to vector<8xf32>
    %94 = vector.shape_cast %93 : vector<8xf32> to vector<8x1xf32>
    %95 = math.log %94 : vector<8x1xf32>
    %96 = vector.broadcast %95 : vector<8x1xf32> to vector<8x128xf32>
    %97 = arith.subf %91, %96 : vector<8x128xf32>
    %c0_32 = arith.constant 0 : index
    %c0_33 = arith.constant 0 : index
    %98 = vector.load %arg5[%c0_32, %c0_33] : memref<8x128xf32, #tpu.memory_space<vmem>>, vector<8x128xf32>
    tpu.vector_store %arg5[%c0_32, %c0_33], %97 {strides = array<i32>} : memref<8x128xf32, #tpu.memory_space<vmem>>, vector<8x128xf32>,
    return
  }
}

</mosaic_0001>

<bundles_post_ra>
// kernel: bestnet_forward.1
= control target key start
LH: loop header
LB: loop body
LE: loop exit
PB: predicated region body
PF: predicated region fallthrough
CT: control target
= control target key end

     0   :  { %s469_s0 = inlined_call_operand.vmem [shape: f32[8,64], index: 0, kind: input, shape index: {}]   ;;  %s470_s1 = inlined_call_operand.vmem [shape: f32[64,128], index: 1, kind: input, shape index: {}]   ;;  %s471_s2 = inlined_call_operand.vmem [shape: f32[128,128], index: 2, kind: input, shape index: {}]   ;;  %s472_s3 = inlined_call_operand.vmem [shape: f32[128,128], index: 3, kind: input, shape index: {}]   ;;  %s473_s4 = inlined_call_operand.vmem [shape: f32[6,128], index: 4, kind: input, shape index: {}]   ;;  %s474_s5 = inlined_call_operand.hbm [shape: f32[8,128], index: 5, kind: output, shape index: {}]  }
   0x1   :  { %v30_v0 = vld [vmem:[%s470_s1 + $0x38] sm:$0xff]  ;;  %v29_v1 = vld [vmem:[%s470_s1 + $0x30] sm:$0xff]  ;;  %v28_v2 = vld [vmem:[%s470_s1 + $0x28] sm:$0xff] }
   0x2   :  { %43 = vmatpush.msra.mxu0 %v30_v0 }
   0x4   :  { %44 = vmatpush.msra.mxu0 %v29_v1 }
   0x5   :  { %10 = vsyncpa [#allocation3], 0  ;;  %v27_v3 = vld [vmem:[%s470_s1 + $0x20] sm:$0xff]  ;;  %v26_v4 = vld [vmem:[%s470_s1 + $0x18] sm:$0xff]  ;;  %vm31_vm0 = vcmask 523264   ;;  %s254_s20 = sshll.u32 %s474_s5, 4  ;;  %s255_s20 = int_to_ptr.hbm [resolvable:$true] %s254_s20 }
   0x6   :  { %45 = vmatpush.msra.mxu0 %v28_v2  ;;  %v25_v5 = vld [vmem:[%s470_s1 + $0x10] sm:$0xff]  ;;  %v24_v6 = vld [vmem:[%s470_s1 + $0x8] sm:$0xff]  ;;  %v23_v7 = vld [vmem:[%s470_s1] sm:$0xff] }
   0x7   :  { %v21_v8 = vld [vmem:[%s469_s0] sm:$0xff]  ;;  %v105_v9 = vld [vmem:[%s471_s2 + $0x78] sm:$0xff]  ;;  %v104_v10 = vld [vmem:[%s471_s2 + $0x70] sm:$0xff] }
   0x8   :  { %46 = vmatpush.msra.mxu0 %v27_v3  ;;  %106 = vmatpush.msra.mxu1 %v105_v9  ;;  %v103_v11 = vld [vmem:[%s471_s2 + $0x68] sm:$0xff]  ;;  %v102_v12 = vld [vmem:[%s471_s2 + $0x60] sm:$0xff]  ;;  %v101_v13 = vld [vmem:[%s471_s2 + $0x58] sm:$0xff] }
   0x9   :  { %v100_v14 = vld [vmem:[%s471_s2 + $0x50] sm:$0xff]  ;;  %v99_v15 = vld [vmem:[%s471_s2 + $0x48] sm:$0xff]  ;;  %v98_v16 = vld [vmem:[%s471_s2 + $0x40] sm:$0xff] }
   0xa   :  { %47 = vmatpush.msra.mxu0 %v26_v4  ;;  %107 = vmatpush.msra.mxu1 %v104_v10  ;;  %v97_v17 = vld [vmem:[%s471_s2 + $0x38] sm:$0xff]  ;;  %v96_v21 = vld [vmem:[%s471_s2 + $0x30] sm:$0xff]  ;;  %v95_v24 = vld [vmem:[%s471_s2 + $0x28] sm:$0xff] }
   0xb   :  { %v94_v27 = vld [vmem:[%s471_s2 + $0x20] sm:$0xff]  ;;  %v93_v30 = vld [vmem:[%s471_s2 + $0x18] sm:$0xff]  ;;  %v92_v33 = vld [vmem:[%s471_s2 + $0x10] sm:$0xff] }
   0xc   :  { %48 = vmatpush.msra.mxu0 %v25_v5  ;;  %108 = vmatpush.msra.mxu1 %v103_v11  ;;  %v91_v36 = vld [vmem:[%s471_s2 + $0x8] sm:$0xff]  ;;  %v90_v39 = vld [vmem:[%s471_s2] sm:$0xff]  ;;  %v176_v59 = vld [vmem:[%s472_s3 + $0x78] sm:$0xff] }
   0xd   :  { %v410_v49 = vld [vmem:[%s473_s4] sm:$0x3f]  ;;  %177 = vmatpush.msra.mxu2 %v176_v59  ;;  %v175_v60 = vld [vmem:[%s472_s3 + $0x70] sm:$0xff]  ;;  %v174_v61 = vld [vmem:[%s472_s3 + $0x68] sm:$0xff] }
   0xe   :  { %49 = vmatpush.msra.mxu0 %v24_v6  ;;  %109 = vmatpush.msra.mxu1 %v102_v12  ;;  %v87_v55 = vperm.slane %v410_v49, 1  ;;  %v173_v62 = vld [vmem:[%s472_s3 + $0x60] sm:$0xff]  ;;  %v172_v63 = vld [vmem:[%s472_s3 + $0x58] sm:$0xff]  ;;  %v171_v0 = vld [vmem:[%s472_s3 + $0x50] sm:$0xff] }
   0xf   :  { %178 = vmatpush.msra.mxu2 %v175_v60  ;;  %v170_v1 = vld [vmem:[%s472_s3 + $0x48] sm:$0xff]  ;;  %v169_v2 = vld [vmem:[%s472_s3 + $0x40] sm:$0xff]  ;;  %v168_v3 = vld [vmem:[%s472_s3 + $0x38] sm:$0xff] }
  0x10   :  { %50 = vmatpush.msra.mxu0 %v23_v7  ;;  %110 = vmatpush.msra.mxu1 %v101_v13  ;;  %v167_v7 = vld [vmem:[%s472_s3 + $0x30] sm:$0xff]  ;;  %v166_v10 = vld [vmem:[%s472_s3 + $0x28] sm:$0xff]  ;;  %v165_v13 = vld [vmem:[%s472_s3 + $0x20] sm:$0xff] }
  0x11   :  { %263 = vmatmul.msk.f32.vlgmr.msra.gmra.mxu0 %vm31_vm0, %v21_v8  ;;  %179 = vmatpush.msra.mxu2 %v174_v61 }
  0x12   :  { %111 = vmatpush.msra.mxu1 %v100_v14 }
  0x13   :  { %180 = vmatpush.msra.mxu2 %v173_v62 }
  0x14   :  { %112 = vmatpush.msra.mxu1 %v99_v15 }
  0x15   :  { %181 = vmatpush.msra.mxu2 %v172_v63 }
  0x16   :  { %113 = vmatpush.msra.mxu1 %v98_v16  ;;  %v164_v16 = vld [vmem:[%s472_s3 + $0x18] sm:$0xff] }
  0x17   :  { %182 = vmatpush.msra.mxu2 %v171_v0 }
  0x18   :  { %114 = vmatpush.msra.mxu1 %v97_v17 }
  0x19   :  { %183 = vmatpush.msra.mxu2 %v170_v1 }
  0x1a   :  { %115 = vmatpush.msra.mxu1 %v96_v21 }
  0x1b   :  { %184 = vmatpush.msra.mxu2 %v169_v2 }
  0x1c   :  { %116 = vmatpush.msra.mxu1 %v95_v24 }
  0x1d   :  { %185 = vmatpush.msra.mxu2 %v168_v3 }
  0x1e   :  { %117 = vmatpush.msra.mxu1 %v94_v27 }
  0x1f   :  { %186 = vmatpush.msra.mxu2 %v167_v7  ;;  %v232_v7 = vlaneseq }
  0x20   :  { %118 = vmatpush.msra.mxu1 %v93_v30 }
  0x21   :  { %187 = vmatpush.msra.mxu2 %v166_v10 }
  0x22   :  { %119 = vmatpush.msra.mxu1 %v92_v33 }
  0x23   :  { %188 = vmatpush.msra.mxu2 %v165_v13 }
  0x24   :  { %120 = vmatpush.msra.mxu1 %v91_v36 }
  0x25   :  { %189 = vmatpush.msra.mxu2 %v164_v16 }
  0x26   :  { %121 = vmatpush.msra.mxu1 %v90_v39 }
  0x8e   :  { %v52_v18 = vpop.f32.mrf.mxu0 }
  0x8f   :  { %v55_v19 = vrot.slane %v52_v18, 4  ;;  %v62_v20 = vmul.f32 %v52_v18, %v52_v18 }
  0x91   :  { %v56_v22 = vadd.f32 %v55_v19, %v52_v18  ;;  %v63_v23 = vrot.slane %v62_v20, 4  ;;  %v163_v19 = vld [vmem:[%s472_s3 + $0x10] sm:$0xff] }
  0x92   :  { %190 = vmatpush.msra.mxu2 %v163_v19 }
  0x93   :  { %v57_v25 = vrot.slane %v56_v22, 2  ;;  %v64_v26 = vadd.f32 %v63_v23, %v62_v20 }
  0x95   :  { %v58_v28 = vadd.f32 %v57_v25, %v56_v22  ;;  %v65_v29 = vrot.slane %v64_v26, 2  ;;  %v162_v22 = vld [vmem:[%s472_s3 + $0x8] sm:$0xff]  ;;  %v161_v25 = vld [vmem:[%s472_s3] sm:$0xff]  ;;  %s301_s3 = smov [#allocation2]  }
  0x96   :  { %191 = vmatpush.msra.mxu2 %v162_v22  ;;  %s252_s17 = sshll.u32 %s301_s3, 4  ;;  %s253_s17 = int_to_ptr.vmem [resolvable:$true] %s252_s17 }
  0x97   :  { %v59_v31 = vrot.slane %v58_v28, 1  ;;  %v66_v32 = vadd.f32 %v65_v29, %v64_v26 }
  0x98   :  { %192 = vmatpush.msra.mxu2 %v161_v25 }
  0x99   :  { %v60_v34 = vadd.f32 %v59_v31, %v58_v28  ;;  %v67_v35 = vrot.slane %v66_v32, 1 }
  0x9b   :  { %v61_v37 = vmul.f32 0.125, %v60_v34  ;;  %v68_v38 = vadd.f32 %v67_v35, %v66_v32 }
  0x9d   :  { %v69_v40 = vmul.f32 0.125, %v68_v38  ;;  %v70_v41 = vmul.f32 %v61_v37, %v61_v37  ;;  %v84_v53 = vsub.f32 %v52_v18, %v61_v37 }
  0x9f   :  { %v71_v42 = vsub.f32 %v69_v40, %v70_v41  ;;  %v158_v40 = vperm.slane %v410_v49, 3 }
  0xa1   :  { %v72_v43 = vadd.f32 1e-05, %v71_v42 }
  0xa3   :  { %265 = vrsqrt.f32 %v72_v43  ;;  %vm79_vm2 = vweird.f32 %v72_v43 }
  0xa9   :  { %v266_v44 = vpop.eup %265 }
  0xaa   :  { %v74_v45 = vmul.f32 %v266_v44, %v72_v43  ;;  %vm80_vm1 = vweird.f32 %v266_v44 }
  0xab   :  { %vm81_vm3 = vmor %vm79_vm2, %vm80_vm1 }
  0xac   :  { %v75_v46 = vmul.f32 %v266_v44, %v74_v45 }
  0xae   :  { %v76_v47 = vmul.f32 0.5, %v75_v46 }
  0xb0   :  { %v77_v48 = vsub.f32 1.5, %v76_v47 }
  0xb2   :  { %v78_v50 = vmul.f32 %v266_v44, %v77_v48 }
  0xb4   :  { %v82_v51 = vsel %vm81_vm3, %v266_v44, %v78_v50 }
  0xb5   :  { %v83_v52 = vmul.f32 %v82_v51, %v410_v49 }
  0xb7   :  { %v85_v54 = vperm.slane %v83_v52, 0 }
  0xb9   :  { %v86_v56 = vmul.f32 %v85_v54, %v84_v53 }
  0xbb   :  { %v88_v57 = vadd.f32 %v87_v55, %v86_v56 }
  0xbd   :  { %v89_v58 = vmax.f32 %v88_v57, 0.0 }
  0xbf   :  { %122 = vmatmul.f32.vlgmr.msra.gmra.mxu1 %v89_v58 }
 0x13c   :  { %v123_v4 = vpop.f32.mrf.mxu1 }
 0x13d   :  { %v126_v5 = vrot.slane %v123_v4, 4  ;;  %v133_v6 = vmul.f32 %v123_v4, %v123_v4 }
 0x13f   :  { %v127_v8 = vadd.f32 %v126_v5, %v123_v4  ;;  %v134_v9 = vrot.slane %v133_v6, 4 }
 0x141   :  { %v128_v11 = vrot.slane %v127_v8, 2  ;;  %v135_v12 = vadd.f32 %v134_v9, %v133_v6 }
 0x143   :  { %v129_v14 = vadd.f32 %v128_v11, %v127_v8  ;;  %v136_v15 = vrot.slane %v135_v12, 2  ;;  %v229_v11 = vperm.slane %v410_v49, 5 }
 0x145   :  { %v130_v17 = vrot.slane %v129_v14, 1  ;;  %v137_v18 = vadd.f32 %v136_v15, %v135_v12  ;;  %v233_v12 = vand.u32 127, %v232_v7 }
 0x147   :  { %v131_v20 = vadd.f32 %v130_v17, %v129_v14  ;;  %v138_v21 = vrot.slane %v137_v18, 1  ;;  %vm234_vm10 = vcmp.lt.s32.totalorder %v233_v12, 10 }
 0x149   :  { %v132_v23 = vmul.f32 0.125, %v131_v20  ;;  %v139_v24 = vadd.f32 %v138_v21, %v137_v18 }
 0x14b   :  { %v140_v26 = vmul.f32 0.125, %v139_v24  ;;  %v141_v27 = vmul.f32 %v132_v23, %v132_v23  ;;  %v155_v38 = vsub.f32 %v123_v4, %v132_v23 }
 0x14d   :  { %v142_v28 = vsub.f32 %v140_v26, %v141_v27 }
 0x14f   :  { %v143_v29 = vadd.f32 1e-05, %v142_v28 }
 0x151   :  { %267 = vrsqrt.f32 %v143_v29  ;;  %vm150_vm5 = vweird.f32 %v143_v29 }
 0x157   :  { %v268_v30 = vpop.eup %267 }
 0x158   :  { %v145_v31 = vmul.f32 %v268_v30, %v143_v29  ;;  %vm151_vm4 = vweird.f32 %v268_v30 }
 0x159   :  { %vm152_vm6 = vmor %vm150_vm5, %vm151_vm4 }
 0x15a   :  { %v146_v32 = vmul.f32 %v268_v30, %v145_v31 }
 0x15c   :  { %v147_v33 = vmul.f32 0.5, %v146_v32 }
 0x15e   :  { %v148_v34 = vsub.f32 1.5, %v147_v33 }
 0x160   :  { %v149_v35 = vmul.f32 %v268_v30, %v148_v34 }
 0x162   :  { %v153_v36 = vsel %vm152_vm6, %v268_v30, %v149_v35 }
 0x163   :  { %v154_v37 = vmul.f32 %v153_v36, %v410_v49 }
 0x165   :  { %v156_v39 = vperm.slane %v154_v37, 2 }
 0x167   :  { %v157_v41 = vmul.f32 %v156_v39, %v155_v38 }
 0x169   :  { %v159_v42 = vadd.f32 %v158_v40, %v157_v41 }
 0x16b   :  { %v160_v43 = vmax.f32 %v159_v42, 0.0 }
 0x16d   :  { %193 = vmatmul.f32.vlgmr.msra.gmra.mxu2 %v160_v43 }
 0x1f0   :  { %v194_v44 = vpop.f32.mrf.mxu2 }
 0x1f1   :  { %v197_v45 = vrot.slane %v194_v44, 4  ;;  %v204_v46 = vmul.f32 %v194_v44, %v194_v44 }
 0x1f3   :  { %v198_v47 = vadd.f32 %v197_v45, %v194_v44  ;;  %v205_v48 = vrot.slane %v204_v46, 4 }
 0x1f5   :  { %v199_v50 = vrot.slane %v198_v47, 2  ;;  %v206_v51 = vadd.f32 %v205_v48, %v204_v46 }
 0x1f7   :  { %v200_v52 = vadd.f32 %v199_v50, %v198_v47  ;;  %v207_v53 = vrot.slane %v206_v51, 2 }
 0x1f9   :  { %v201_v54 = vrot.slane %v200_v52, 1  ;;  %v208_v55 = vadd.f32 %v207_v53, %v206_v51 }
 0x1fb   :  { %v202_v56 = vadd.f32 %v201_v54, %v200_v52  ;;  %v209_v57 = vrot.slane %v208_v55, 1 }
 0x1fd   :  { %v203_v58 = vmul.f32 0.125, %v202_v56  ;;  %v210_v59 = vadd.f32 %v209_v57, %v208_v55 }
 0x1ff   :  { %v211_v60 = vmul.f32 0.125, %v210_v59  ;;  %v212_v61 = vmul.f32 %v203_v58, %v203_v58  ;;  %v226_v9 = vsub.f32 %v194_v44, %v203_v58 }
 0x201   :  { %v213_v62 = vsub.f32 %v211_v60, %v212_v61 }
 0x203   :  { %v214_v63 = vadd.f32 1e-05, %v213_v62 }
 0x205   :  { %269 = vrsqrt.f32 %v214_v63  ;;  %vm221_vm8 = vweird.f32 %v214_v63 }
 0x20b   :  { %v270_v0 = vpop.eup %269 }
 0x20c   :  { %v216_v1 = vmul.f32 %v270_v0, %v214_v63  ;;  %vm222_vm7 = vweird.f32 %v270_v0 }
 0x20d   :  { %vm223_vm9 = vmor %vm221_vm8, %vm222_vm7 }
 0x20e   :  { %v217_v2 = vmul.f32 %v270_v0, %v216_v1 }
 0x210   :  { %v218_v3 = vmul.f32 0.5, %v217_v2 }
 0x212   :  { %v219_v4 = vsub.f32 1.5, %v218_v3 }
 0x214   :  { %v220_v5 = vmul.f32 %v270_v0, %v219_v4 }
 0x216   :  { %v224_v6 = vsel %vm223_vm9, %v270_v0, %v220_v5 }
 0x217   :  { %v225_v8 = vmul.f32 %v224_v6, %v410_v49 }
 0x219   :  { %v227_v10 = vperm.slane %v225_v8, 4 }
 0x21b   :  { %v228_v13 = vmul.f32 %v227_v10, %v226_v9 }
 0x21d   :  { %v230_v14 = vadd.f32 %v229_v11, %v228_v13 }
 0x21f   :  { %v231_v15 = vmax.f32 %v230_v14, 0.0 }
 0x221   :  { %v235_v16 = vsel %vm234_vm10, %v231_v15, -inf }
 0x222   :  { %236 = vmax.xlane.f32.xlu0 %v235_v16 }
 0x295   :  { %v237_v17 = vpop.xlane.xlu0 %236 }
 0x296   :  { %v238_v18 = vsub.f32 %v235_v16, %v237_v17 }
 0x298   :  { %v239_v19 = vmul.f32 1.442695, %v238_v18 }
 0x29a   :  { %271 = vpow2.f32 %v239_v19 }
 0x2a0   :  { %v272_v20 = vpop.eup %271 }
 0x2a1   :  { %241 = vadd.xlane.f32.xlu0 %v272_v20 }
 0x314   :  { %v242_v21 = vpop.xlane.xlu0 %241 }
 0x315   :  { %273 = vlog2.f32 %v242_v21 }
 0x31b   :  { %v274_v22 = vpop.eup %273 }
 0x31c   :  { %v244_v49 = vmul.f32 0.6931472, %v274_v22 }
 0x31e   :  { %v245_v23 = vsub.f32 %v238_v18, %v244_v49 }
 0x320   :  { %246 = vst [vmem:[#allocation2] sm:$0xff] %v245_v23 }
 0x321   :  { %257 = dma.vmem_to_hbm [thread:$0]  %s253_s17, 128, %s255_s20, [#allocation3]  }
 0x322   :  { %299 = dma.done.wait [#allocation3], 128  }
 0x323   :  { %300 = vsyncadd [#allocation3], 4294967168 }
 0x324   :  { %262 = vsyncpa [#allocation3], 1 }

</bundles_post_ra>
